<compile_context>
chip_gen: v7x
topology: tpu7x:2x2x1
jax: 0.10.0
libtpu: 0.0.40
codegen_flags: <defaults>
</compile_context>

<pallas_src>
import functools

import numpy as np
import jax
import jax.numpy as jnp
from jax import lax
from jax.experimental import pallas as pl
from jax.experimental.pallas import tpu as pltpu


_NEG_BIG = -1.0e30  # finite sentinel (avoids -inf - -inf = NaN in max-subtraction)


def _round_up(x, m):
    return ((x + m - 1) // m) * m


def _pad2d(x, rows, cols):
    r, c = x.shape
    return jnp.pad(x, ((0, rows - r), (0, cols - c)))


def _vmem_budget_and_block_rows():
    """(physical per-core VMEM, scoped-VMEM cap to request, default row tile)."""
    kind = ""
    try:
        kind = jax.devices()[0].device_kind.lower()
    except Exception:
        pass
    if "v7" in kind:
        return 64 * 2**20, 56 * 2**20, 256     # 64 MiB/TC -> leave compiler headroom
    if "v6" in kind:
        return 128 * 2**20, 100 * 2**20, 256   # 128 MiB physical, 256-wide MXU
    if "v5e" in kind or "v5 lite" in kind or "v5lite" in kind:
        return 128 * 2**20, 100 * 2**20, 128   # 128-wide MXU -> TM=128
    if "v5" in kind or "v4" in kind:
        return 128 * 2**20, 100 * 2**20, 256
    return 64 * 2**20, 48 * 2**20, 128         # unknown: conservative


def _resident_key_spec(n_pad, d_pad):
    """Full key matrix resident in VMEM; constant index_map => fetched once.

    Single-buffered via pipeline_mode=pl.Buffered(1) (default double-buffering
    would allocate 2x n_pad*d_pad even though the block never changes)."""
    try:
        return pl.BlockSpec((n_pad, d_pad), lambda i: (0, 0),
                            pipeline_mode=pl.Buffered(1))
    except TypeError:  # very old jax without pipeline_mode: accept 2x buffering
        return pl.BlockSpec((n_pad, d_pad), lambda i: (0, 0))


# --------------------------------------------------------------------------- #
# Resident-key kernel: full keys in VMEM, row tiles over the grid.
# --------------------------------------------------------------------------- #
def _ntxent_resident_kernel(k_ref, *refs, n_valid, tm, batch_size, inv_t,
                            mask_pad_cols, derive_partner, mxu_dtype):
    """k_ref : (n_pad, d_pad) resident, normalized keys (storage = MXU dtype).
    refs  : (out_ref,) when the partner tile is derived from k_ref,
            (p_ref, out_ref) when it is streamed (tm does not divide B).
    out   : (8, 128) lane-dense block holding this tile's summed loss."""
    if derive_partner:
        p_ref = None
        (out_ref,) = refs
    else:
        p_ref, out_ref = refs

    i = pl.program_id(0)

    # Query tile = rows [i*tm, i*tm+tm) of the resident keys, scaled by 1/T.
    r0 = pl.multiple_of(i * tm, tm)
    q_f32 = k_ref[pl.ds(r0, tm), :].astype(jnp.float32) * inv_t
    q_m = q_f32.astype(mxu_dtype)

    # (tm, n_pad) similarity tile from the MXU; contraction over the stored
    # last dim of both operands -> no transpose, f32 accumulation.
    sim = lax.dot_general(q_m, k_ref[...],
                          dimension_numbers=(((1,), (1,)), ((), ())),
                          preferred_element_type=jnp.float32)

    row = i * tm + lax.broadcasted_iota(jnp.int32, sim.shape, 0)
    col = lax.broadcasted_iota(jnp.int32, sim.shape, 1)
    self_mask = row == col
    if mask_pad_cols:  # only when n_pad > n (rare; saves a compare+or otherwise)
        self_mask = self_mask | (col >= n_valid)
    masked = jnp.where(self_mask, jnp.float32(_NEG_BIG), sim)

    m = jnp.max(masked, axis=-1, keepdims=True)
    lse = m + jnp.log(jnp.sum(jnp.exp(masked - m), axis=-1, keepdims=True))

    # Positive partner of row r is row (r + B) mod 2B; when tm | B the whole
    # tile's partners form one contiguous, non-wrapping slice of the keys.
    if derive_partner:
        p0 = i * tm + batch_size
        p0 = jnp.where(p0 >= n_valid, p0 - n_valid, p0)
        p0 = pl.multiple_of(p0, tm)
        p = k_ref[pl.ds(p0, tm), :]
    else:
        p = p_ref[...]
    # Same operand dtypes as the MXU path (bf16/f32 inputs, f32 accumulate).
    pos = jnp.sum(q_m.astype(jnp.float32) * p.astype(jnp.float32),
                  axis=-1, keepdims=True)

    row_ids = i * tm + lax.broadcasted_iota(jnp.int32, (tm, 1), 0)
    per_row = jnp.where(row_ids < n_valid, lse - pos, 0.0)

    # Reduce this tile's contribution in-kernel; lane-dense (8,128) store.
    out_ref[...] = jnp.broadcast_to(jnp.sum(per_row, keepdims=True), (8, 128))


# --------------------------------------------------------------------------- #
# Flash-style kernel: (row tile x key-column tile) grid, online log-sum-exp.
# Used when the resident key matrix would not fit the VMEM budget (v7x at
# large contrastive batch sizes).
# --------------------------------------------------------------------------- #
def _ntxent_flash_kernel(q_ref, p_ref, k_ref, out_ref, m_sc, l_sc, *,
                         n_valid, tm, tn, mask_pad_cols):
    """q_ref: (tm, d_pad) query rows, pre-scaled by 1/T (wrapper).
    p_ref: (tm, d_pad) positive-partner rows.
    k_ref: (tn, d_pad) key-column tile.
    m_sc, l_sc: (tm, 1) f32 running max / running sum scratch."""
    i = pl.program_id(0)
    j = pl.program_id(1)

    @pl.when(j == 0)
    def _():
        m_sc[...] = jnp.full(m_sc.shape, _NEG_BIG, dtype=jnp.float32)
        l_sc[...] = jnp.zeros(l_sc.shape, dtype=jnp.float32)

    q_m = q_ref[...]
    sim = lax.dot_general(q_m, k_ref[...],
                          dimension_numbers=(((1,), (1,)), ((), ())),
                          preferred_element_type=jnp.float32)

    row = i * tm + lax.broadcasted_iota(jnp.int32, sim.shape, 0)
    col = j * tn + lax.broadcasted_iota(jnp.int32, sim.shape, 1)
    self_mask = row == col
    if mask_pad_cols:
        self_mask = self_mask | (col >= n_valid)
    masked = jnp.where(self_mask, jnp.float32(_NEG_BIG), sim)

    m_prev = m_sc[...]
    m_new = jnp.maximum(m_prev, jnp.max(masked, axis=-1, keepdims=True))
    l_sc[...] = (jnp.exp(m_prev - m_new) * l_sc[...]
                 + jnp.sum(jnp.exp(masked - m_new), axis=-1, keepdims=True))
    m_sc[...] = m_new

    @pl.when(j == pl.num_programs(1) - 1)
    def _():
        lse = m_sc[...] + jnp.log(l_sc[...])
        pos = jnp.sum(q_m.astype(jnp.float32) * p_ref[...].astype(jnp.float32),
                      axis=-1, keepdims=True)
        row_ids = i * tm + lax.broadcasted_iota(jnp.int32, (tm, 1), 0)
        per_row = jnp.where(row_ids < n_valid, lse - pos, 0.0)
        out_ref[...] = jnp.broadcast_to(jnp.sum(per_row, keepdims=True), (8, 128))


# --------------------------------------------------------------------------- #
# Wrapper
# --------------------------------------------------------------------------- #
def ntxent_loss(zis, zjs, *, batch_size, temperature, use_cosine_similarity=True,
                block_rows=None, key_block_cols=None, mxu_dtype=None):
    """NT-Xent loss of two (B, D) embedding batches. Returns a scalar float32.

    block_rows     : query-row tile TM (default: 128 on v5e, 256 on v6e/v7x).
    key_block_cols : force the flash (column-tiled) kernel with this key tile.
                     Default None: auto-selected when the resident-key footprint
                     exceeds the per-chip VMEM budget.
    mxu_dtype      : None (default) -> bf16 MXU with f32 accumulation/softmax
                     (recommended fast path); jnp.float32 reproduces the PyTorch
                     module's numerics.
    """
    n = 2 * batch_size
    d = zis.shape[-1]

    phys_vmem, vmem_cap, default_tm = _vmem_budget_and_block_rows()
    if block_rows is None:
        block_rows = default_tm
    if mxu_dtype is None:
        mxu_dtype = jnp.bfloat16
    store_dtype = jnp.dtype(mxu_dtype)
    itemsize = store_dtype.itemsize

    reps = jnp.concatenate([zjs, zis], axis=0).astype(jnp.float32)       # (n, d)
    if use_cosine_similarity:
        # Normalized once in the wrapper (rsqrt), not per grid step.
        # TODO(synk): PyTorch's CosineSimilarity clamps ||x||*||y|| at 1e-8; this
        # per-row clamp differs only for near-zero embeddings.
        sq = jnp.sum(reps * reps, axis=-1, keepdims=True)
        reps = reps * lax.rsqrt(jnp.maximum(sq, 1e-16))
    inv_t = float(1.0 / temperature)

    d_pad = _round_up(max(d, 128), 128)
    tm = min(_round_up(n, 8), _round_up(block_rows, 8))
    n_pad = _round_up(n, tm)
    num_tiles = n_pad // tm
    derive_partner = (batch_size % tm == 0)   # partner slice never wraps then

    # Realistic resident-path footprint: single-buffered keys, (optional)
    # double-buffered streamed partner, q temporaries, ~6 (tm, n_pad) f32/i32
    # intermediates (sim/masked/exp/iotas/mask), output blocks.
    est_resident = (n_pad * d_pad * itemsize
                    + (0 if derive_partner else 2 * tm * d_pad * itemsize)
                    + 2 * tm * d_pad * 4
                    + 6 * tm * n_pad * 4
                    + 2 * 8 * 128 * 4)
    use_flash = (key_block_cols is not None) or (int(est_resident * 1.25) > vmem_cap)

    if not use_flash:
        k_p = _pad2d(reps, n_pad, d_pad).astype(store_dtype)   # cast once, wrapper-side
        inputs = [k_p]
        in_specs = [_resident_key_spec(n_pad, d_pad)]
        if not derive_partner:
            partners = jnp.roll(reps, -batch_size, axis=0)
            p_p = _pad2d(partners, n_pad, d_pad).astype(store_dtype)
            inputs.append(p_p)
            in_specs.append(pl.BlockSpec((tm, d_pad), lambda i: (i, 0)))

        vmem_limit = int(min(vmem_cap, max(32 * 2**20, est_resident * 1.25)))
        kernel = functools.partial(
            _ntxent_resident_kernel, n_valid=n, tm=tm, batch_size=batch_size,
            inv_t=inv_t, mask_pad_cols=(n_pad > n),
            derive_partner=derive_partner, mxu_dtype=store_dtype)

        out = pl.pallas_call(
            kernel,
            out_shape=jax.ShapeDtypeStruct((num_tiles * 8, 128), jnp.float32),
            grid=(num_tiles,),
            in_specs=in_specs,
            out_specs=pl.BlockSpec((8, 128), lambda i: (i, 0)),
            compiler_params=pltpu.CompilerParams(
                dimension_semantics=("parallel",),
                vmem_limit_bytes=vmem_limit),
        )(*inputs)
    else:
        if key_block_cols is None:
            key_block_cols = 512
        tn = min(_round_up(n, 128), _round_up(key_block_cols, 128))
        n_cols_pad = _round_up(n, tn)
        num_col_tiles = n_cols_pad // tn

        partners = jnp.roll(reps, -batch_size, axis=0)
        q_p = _pad2d(reps * jnp.float32(inv_t), n_pad, d_pad).astype(store_dtype)
        p_p = _pad2d(partners, n_pad, d_pad).astype(store_dtype)
        k_p = _pad2d(reps, n_cols_pad, d_pad).astype(store_dtype)

        est_flash = (4 * tm * d_pad * itemsize     # q + p tiles, double buffered
                     + 2 * tn * d_pad * itemsize   # key column tiles, double buffered
                     + 6 * tm * tn * 4             # sim/masked/exp/iotas/mask
                     + 2 * tm * 128 * 4            # m/l scratch (lane padded)
                     + 2 * 8 * 128 * 4)
        vmem_limit = int(min(vmem_cap, max(32 * 2**20, est_flash * 1.25)))
        kernel = functools.partial(
            _ntxent_flash_kernel, n_valid=n, tm=tm, tn=tn,
            mask_pad_cols=(n_cols_pad > n))

        out = pl.pallas_call(
            kernel,
            out_shape=jax.ShapeDtypeStruct((num_tiles * 8, 128), jnp.float32),
            grid=(num_tiles, num_col_tiles),
            in_specs=[
                pl.BlockSpec((tm, d_pad), lambda i, j: (i, 0)),   # queries (pre-scaled)
                pl.BlockSpec((tm, d_pad), lambda i, j: (i, 0)),   # positive partners
                pl.BlockSpec((tn, d_pad), lambda i, j: (j, 0)),   # key column tile
            ],
            out_specs=pl.BlockSpec((8, 128), lambda i, j: (i, 0)),
            scratch_shapes=[pltpu.VMEM((tm, 1), jnp.float32),
                            pltpu.VMEM((tm, 1), jnp.float32)],
            compiler_params=pltpu.CompilerParams(
                dimension_semantics=("parallel", "arbitrary"),
                vmem_limit_bytes=vmem_limit),
        )(q_p, p_p, k_p)

    # One scalar per tile (row 0 of each (8,128) block holds the tile sum).
    return jnp.sum(out[::8, 0]) / jnp.float32(n)


# --------------------------------------------------------------------------- #
# NumPy reference mirroring the PyTorch forward exactly.
# --------------------------------------------------------------------------- #
def _ref_loss_np(zis, zjs, batch_size, temperature, use_cosine=True):
    reps = np.concatenate([np.asarray(zjs), np.asarray(zis)], axis=0).astype(np.float64)
    n = 2 * batch_size
    if use_cosine:
        norms = np.linalg.norm(reps, axis=-1, keepdims=True)
        rn = reps / np.maximum(norms, 1e-8)
        sim = rn @ rn.T
    else:
        sim = reps @ reps.T
    l_pos = np.diag(sim, batch_size)
    r_pos = np.diag(sim, -batch_size)
    positives = np.concatenate([l_pos, r_pos]).reshape(n, 1)
    mask = (1 - (np.eye(n) + np.eye(n, k=-batch_size) + np.eye(n, k=batch_size))).astype(bool)
    negatives = sim[mask].reshape(n, -1)
    logits = np.concatenate([positives, negatives], axis=1) / temperature
    lse = np.log(np.exp(logits).sum(axis=1))
    return float(np.sum(lse - logits[:, 0]) / n)


if __name__ == "__main__":
    temperature = 0.5
    key = jax.random.PRNGKey(0)
    k1, k2, k3, k4 = jax.random.split(key, 4)

    # 1) Small shapes (streamed-partner fallback path), exact f32 numerics.
    b1, h1 = 4, 32
    zis1 = jax.random.normal(k1, (b1, h1), dtype=jnp.float32)
    zjs1 = jax.random.normal(k2, (b1, h1), dtype=jnp.float32)
    loss1 = jax.block_until_ready(ntxent_loss(
        zis1, zjs1, batch_size=b1, temperature=temperature,
        use_cosine_similarity=True, mxu_dtype=jnp.float32))
    ref1 = _ref_loss_np(zis1, zjs1, b1, temperature, use_cosine=True)
    assert np.allclose(float(loss1), ref1, atol=5e-4, rtol=5e-4), (float(loss1), ref1)

    # 2) Larger batch: derived-partner resident path (tm divides B), f32.
    b2, h2 = 128, 64
    zis2 = jax.random.normal(k3, (b2, h2), dtype=jnp.float32)
    zjs2 = jax.random.normal(k4, (b2, h2), dtype=jnp.float32)
    loss2 = jax.block_until_ready(ntxent_loss(
        zis2, zjs2, batch_size=b2, temperature=temperature,
        use_cosine_similarity=True, block_rows=128, mxu_dtype=jnp.float32))
    ref2 = _ref_loss_np(zis2, zjs2, b2, temperature, use_cosine=True)
    assert np.allclose(float(loss2), ref2, atol=1e-3, rtol=1e-3), (float(loss2), ref2)

    # 3) Flash (column-tiled, online-LSE) path forced, f32.
    loss3 = jax.block_until_ready(ntxent_loss(
        zis2, zjs2, batch_size=b2, temperature=temperature,
        use_cosine_similarity=True, block_rows=128, key_block_cols=128,
        mxu_dtype=jnp.float32))
    assert np.allclose(float(loss3), ref2, atol=1e-3, rtol=1e-3), (float(loss3), ref2)

    # 4) Default fast path (bf16 MXU, f32 softmax) — loose tolerance.
    loss4 = jax.block_until_ready(ntxent_loss(
        zis1, zjs1, batch_size=b1, temperature=temperature,
        use_cosine_similarity=True))
    assert np.isfinite(float(loss4)), float(loss4)
    assert np.allclose(float(loss4), ref1, atol=5e-2, rtol=5e-2), (float(loss4), ref1)

    print("KERNEL_OK")
</pallas_src>

<mosaic_0001>
module attributes {stable_mosaic.version = 11 : i64} {
  func.func @_ntxent_resident_kernel(%arg0: i32, %arg1: memref<8x128xf32, #tpu.memory_space<vmem>>, %arg2: memref<8x128xf32, #tpu.memory_space<vmem>>, %arg3: memref<8x128xf32, #tpu.memory_space<vmem>>) attributes {dimension_semantics = [#tpu.dimension_semantics<parallel>], iteration_bounds = array<i64: 1>, scalar_prefetch = 0 : i64, scratch_operands = 0 : i64, tpu.core_type = #tpu.core_type<tc>, window_params = [{pipeline_mode = #tpu.pipeline_mode<synchronous>, transform_indices = @transform_0, window_bounds = array<i64: 8, 128>}, {transform_indices = @transform_1, window_bounds = array<i64: 8, 128>}, {transform_indices = @transform_2, window_bounds = array<i64: 8, 128>}]} {
    %c8_i32 = arith.constant 8 : i32
    %0 = arith.muli %arg0, %c8_i32 : i32
    %1 = tpu.assume_multiple %0, 8 : i32
    %2 = arith.index_cast %1 : i32 to index
    %c0 = arith.constant 0 : index
    %3 = vector.load %arg1[%2, %c0] : memref<8x128xf32, #tpu.memory_space<vmem>>, vector<8x128xf32>
    %cst = arith.constant 2.000000e+00 : f32
    %4 = vector.broadcast %cst : f32 to vector<8x128xf32>
    %5 = arith.mulf %3, %4 : vector<8x128xf32>
    %c0_0 = arith.constant 0 : index
    %c0_1 = arith.constant 0 : index
    %6 = vector.load %arg1[%c0_0, %c0_1] : memref<8x128xf32, #tpu.memory_space<vmem>>, vector<8x128xf32>
    %cst_2 = arith.constant dense<0.000000e+00> : vector<8x8xf32>
    %7 = tpu.matmul %5, %6, %cst_2 {dimension_numbers = #tpu.dot_dimension_numbers<[1], [1], [0], [0], [0, 0, 1, 0], [], []>} : vector<8x128xf32>, vector<8x128xf32>, vector<8x8xf32> -> vector<8x8xf32>
    %c8_i32_3 = arith.constant 8 : i32
    %8 = arith.muli %arg0, %c8_i32_3 : i32
    %9 = tpu.iota {dimensions = array<i32: 0>} : vector<8x8xi32>
    %10 = vector.broadcast %8 : i32 to vector<8x8xi32>
    %11 = arith.addi %10, %9 : vector<8x8xi32>
    %12 = tpu.iota {dimensions = array<i32: 1>} : vector<8x8xi32>
    %13 = arith.cmpi eq, %11, %12 : vector<8x8xi32>
    %cst_4 = arith.constant -1.000000e+30 : f32
    %14 = vector.broadcast %cst_4 : f32 to vector<8x8xf32>
    %15 = arith.select %13, %14, %7 : vector<8x8xi1>, vector<8x8xf32>
    %cst_5 = arith.constant dense<0xFF800000> : vector<8xf32>
    %16 = vector.multi_reduction <maximumf>, %15, %cst_5 [1] : vector<8x8xf32> to vector<8xf32>
    %17 = vector.shape_cast %16 : vector<8xf32> to vector<8x1xf32>
    %18 = vector.broadcast %17 : vector<8x1xf32> to vector<8x8xf32>
    %19 = arith.subf %15, %18 : vector<8x8xf32>
    %20 = math.exp %19 : vector<8x8xf32>
    %cst_6 = arith.constant dense<0.000000e+00> : vector<8xf32>
    %21 = vector.multi_reduction <add>, %20, %cst_6 [1] : vector<8x8xf32> to vector<8xf32>
    %22 = vector.shape_cast %21 : vector<8xf32> to vector<8x1xf32>
    %23 = math.log %22 : vector<8x1xf32>
    %24 = arith.addf %17, %23 : vector<8x1xf32>
    %c0_7 = arith.constant 0 : index
    %c0_8 = arith.constant 0 : index
    %25 = vector.load %arg2[%c0_7, %c0_8] : memref<8x128xf32, #tpu.memory_space<vmem>>, vector<8x128xf32>
    %26 = arith.mulf %5, %25 : vector<8x128xf32>
    %cst_9 = arith.constant dense<0.000000e+00> : vector<8xf32>
    %27 = vector.multi_reduction <add>, %26, %cst_9 [1] : vector<8x128xf32> to vector<8xf32>
    %28 = vector.shape_cast %27 : vector<8xf32> to vector<8x1xf32>
    %c8_i32_10 = arith.constant 8 : i32
    %29 = arith.muli %arg0, %c8_i32_10 : i32
    %30 = tpu.iota {dimensions = array<i32: 0>} : vector<8x1xi32>
    %31 = vector.broadcast %29 : i32 to vector<8x1xi32>
    %32 = arith.addi %31, %30 : vector<8x1xi32>
    %c8_i32_11 = arith.constant 8 : i32
    %33 = vector.broadcast %c8_i32_11 : i32 to vector<8x1xi32>
    %34 = arith.cmpi slt, %32, %33 : vector<8x1xi32>
    %35 = arith.subf %24, %28 : vector<8x1xf32>
    %cst_12 = arith.constant 0.000000e+00 : f32
    %36 = vector.broadcast %cst_12 : f32 to vector<8x1xf32>
    %37 = arith.select %34, %35, %36 : vector<8x1xi1>, vector<8x1xf32>
    %38 = vector.shape_cast %37 : vector<8x1xf32> to vector<1x8x1xf32>
    %cst_13 = arith.constant dense<0.000000e+00> : vector<1xf32>
    %39 = vector.multi_reduction <add>, %38, %cst_13 [1, 2] : vector<1x8x1xf32> to vector<1xf32>
    %40 = vector.shape_cast %39 : vector<1xf32> to vector<1x1x1xf32>
    %41 = vector.extract %40[0, 0, 0] : f32 from vector<1x1x1xf32>
    %42 = vector.broadcast %41 : f32 to vector<1x1xf32>
    %43 = vector.shape_cast %42 : vector<1x1xf32> to vector<1x1xf32>
    %44 = vector.broadcast %43 : vector<1x1xf32> to vector<8x128xf32>
    %c0_14 = arith.constant 0 : index
    %c0_15 = arith.constant 0 : index
    %45 = vector.load %arg3[%c0_14, %c0_15] : memref<8x128xf32, #tpu.memory_space<vmem>>, vector<8x128xf32>
    tpu.vector_store %arg3[%c0_14, %c0_15], %44 {strides = array<i32>} : memref<8x128xf32, #tpu.memory_space<vmem>>, vector<8x128xf32>,
    return
  }
  func.func @transform_0(%arg0: i32) -> (i32, i32) {
    %c0_i32 = arith.constant 0 : i32
    %c0_i32_0 = arith.constant 0 : i32
    %c0_i32_1 = arith.constant 0 : i32
    return %c0_i32, %c0_i32_0 : i32, i32
  }
  func.func @transform_1(%arg0: i32) -> (i32, i32) {
    %c0_i32 = arith.constant 0 : i32
    %c0_i32_0 = arith.constant 0 : i32
    return %arg0, %c0_i32 : i32, i32
  }
  func.func @transform_2(%arg0: i32) -> (i32, i32) {
    %c0_i32 = arith.constant 0 : i32
    %c0_i32_0 = arith.constant 0 : i32
    return %arg0, %c0_i32 : i32, i32
  }
}

</mosaic_0001>

<bundles_post_ra>
// kernel: tpu_custom_call.1
= control target key start
LH: loop header
LB: loop body
LE: loop exit
PB: predicated region body
PF: predicated region fallthrough
CT: control target
= control target key end

     0   :  { %7 = vsyncpa [#allocation3], 0  ;;  %s314_s0 = inlined_call_operand.hbm [shape: f32[8,128], index: 0, kind: input, shape index: {}]   ;;  %s315_s1 = inlined_call_operand.hbm [shape: f32[8,128], index: 1, kind: input, shape index: {}]   ;;  %s316_s2 = inlined_call_operand.hbm [shape: f32[8,128], index: 2, kind: output, shape index: {}]  }
   0x1   :  { %8 = vsyncpa [#allocation6], 0 }
   0x2   :  { %9 = vsyncpa [#allocation4], 0  ;;  %s258_s9 = smov [#allocation2]   ;;  %s259_s11 = smov [#allocation5]  }
   0x3   :  { %s16_s10 = sshll.u32 %s258_s9, 4  ;;  %s26_s12 = sshll.u32 %s259_s11, 4  ;;  %s17_s10 = int_to_ptr.vmem [resolvable:$true] %s16_s10  ;;  %s27_s12 = int_to_ptr.vmem [resolvable:$true] %s26_s12 }
   0x4   :  { %s186_s15 = scalar_lea.hbm %s314_s0, 128 }
   0x5   :  { %p187_p0 = scmp.ne.s32.totalorder %s314_s0, %s186_s15  ;;  %p190_p1 = scmp.lt.u32.totalorder %s186_s15, %s314_s0 }
   0x7   :  { %p192_p2 = pnand %p190_p1, %p187_p0 }
   0x9   :  { %195 = shalt.err (!%p192_p2)
}
   0xa   :  { %s196_s20 = scalar_lea.vmem %s17_s10, 128  ;;  %p201_p4 = scmp.lt.s32.totalorder %s17_s10, %s17_s10 }
   0xb   :  { %p197_p3 = scmp.ne.s32.totalorder %s17_s10, %s196_s20  ;;  %p202_p5 = scmp.lt.s32.totalorder %s196_s20, %s196_s20 }
   0xd   :  { %p203_p6 = por %p202_p5, %p201_p4 }
   0xf   :  { %p204_p7 = pnand %p203_p6, %p197_p3 }
  0x11   :  { %207 = shalt.err (!%p204_p7)
}
  0x12   :  { %19 = dma.hbm_to_vmem [thread:$0]  %s314_s0, 128, %s17_s10, [#allocation3]  }
  0x13   :  { %s208_s25 = scalar_lea.hbm %s315_s1, 128 }
  0x14   :  { %p209_p8 = scmp.ne.s32.totalorder %s315_s1, %s208_s25  ;;  %p212_p9 = scmp.lt.u32.totalorder %s208_s25, %s315_s1 }
  0x16   :  { %p214_p10 = pnand %p212_p9, %p209_p8 }
  0x18   :  { %217 = shalt.err (!%p214_p10)
}
  0x19   :  { %s218_s30 = scalar_lea.vmem %s27_s12, 128  ;;  %p223_p12 = scmp.lt.s32.totalorder %s27_s12, %s27_s12 }
  0x1a   :  { %p219_p11 = scmp.ne.s32.totalorder %s27_s12, %s218_s30  ;;  %p224_p13 = scmp.lt.s32.totalorder %s218_s30, %s218_s30 }
  0x1c   :  { %p225_p0 = por %p224_p13, %p223_p12 }
  0x1e   :  { %p226_p1 = pnand %p225_p0, %p219_p11 }
  0x20   :  { %229 = shalt.err (!%p226_p1)
}
  0x21   :  { %29 = dma.hbm_to_vmem [thread:$0]  %s315_s1, 128, %s27_s12, [#allocation6]  }
  0x22   :  { %252 = dma.done.wait [#allocation3], 128  }
  0x23   :  { %253 = vsyncadd [#allocation3], 4294967168 }
  0x24   :  { %254 = dma.done.wait [#allocation6], 128  }
  0x25   :  { %255 = vsyncadd [#allocation6], 4294967168  ;;  %v260_v0 = vmov 0.0   ;;  %vm261_vm0 = vmmov 0   ;;  %v40_v1 = vld [vmem:[#allocation2] sm:$0xff]  ;;  %v111_v3 = vlaneseq  ;;  %vm119_vm2 = vcmask 64512  }
  0x26   :  { %170 = vmatprep.subr.mxu0 %v260_v0  ;;  %172 = vmatprep.mubr.msk.f32.mxu0 %vm261_vm0, %v260_v0  ;;  %v39_v2 = vmul.f32 2.0, %v40_v1  ;;  %v132_v10 = vld [vmem:[#allocation5] sm:$0xff]  ;;  %vm139_vm3 = vcmask 7168   ;;  %s262_s1 = smov [#allocation7]  }
  0x27   :  { %171 = vmatpush3.xpose.msra.mxu0 %v40_v1  ;;  %v112_v4 = vshrl.u32 %v111_v3, 7  ;;  %v116_v5 = vand.u32 127, %v111_v3  ;;  %s158_s4 = sshll.u32 %s262_s1, 4  ;;  %s159_s4 = int_to_ptr.vmem [resolvable:$true] %s158_s4 }
  0x28   :  { %v133_v11 = vmul.f32 %v132_v10, %v39_v2  ;;  %s230_s6 = scalar_lea.vmem %s159_s4, 128  ;;  %p235_p3 = scmp.lt.s32.totalorder %s159_s4, %s159_s4 }
  0x29   :  { %vm117_vm1 = vcmp.eq.s32.totalorder %v112_v4, %v116_v5  ;;  %p231_p2 = scmp.ne.s32.totalorder %s159_s4, %s230_s6  ;;  %p236_p4 = scmp.lt.s32.totalorder %s230_s6, %s230_s6 }
  0x2a   :  { %173 = vmatmul.mubr.f32.vlgmr.msra.gmra.mrb[0].mxu0 %v39_v2  ;;  %134 = vadd.xlane.f32.xlu1 %v133_v11 }
  0x2b   :  { %p237_p5 = por %p236_p4, %p235_p3 }
  0x2d   :  { %p238_p6 = pnand %p237_p5, %p231_p2 }
  0xb7   :  { %v135_v20 = vpop.xlane.xlu1 %134 }
  0xfd   :  { %v107_v6 = vpop.f32.mrb[0].mxu0 }
  0xfe   :  { %v118_v7 = vsel %vm117_vm1, -1e+30, %v107_v6  ;;  %v174_v8 = vpop.f32.mrb[1].mxu0 }
  0xff   :  { %v120_v9 = vsel %vm119_vm2, %v118_v7, -inf }
 0x100   :  { %121 = vmax.xlane.f32.xlu0 %v120_v9 }
 0x18d   :  { %v122_v12 = vpop.xlane.xlu0 %121 }
 0x18e   :  { %v123_v13 = vsub.f32 %v118_v7, %v122_v12 }
 0x190   :  { %v124_v14 = vmul.f32 1.442695, %v123_v13 }
 0x192   :  { %182 = vpow2.f32 %v124_v14 }
 0x19c   :  { %v183_v15 = vpop.eup %182 }
 0x19d   :  { %v126_v16 = vsel %vm119_vm2, %v183_v15, 0.0 }
 0x19e   :  { %127 = vadd.xlane.f32.xlu0 %v126_v16 }
 0x22b   :  { %v128_v17 = vpop.xlane.xlu0 %127 }
 0x22c   :  { %184 = vlog2.f32 %v128_v17 }
 0x236   :  { %v185_v18 = vpop.eup %184 }
 0x237   :  { %v130_v19 = vmul.f32 0.6931472, %v185_v18 }
 0x239   :  { %v131_v21 = vadd.f32 %v130_v19, %v122_v12 }
 0x23b   :  { %v137_v22 = vsub.f32 %v131_v21, %v135_v20 }
 0x23d   :  { %v140_v23 = vsel %vm139_vm3, %v137_v22, 0.0 }
 0x23e   :  { %141 = vadd.xlane.f32.xlu1 %v140_v23 }
 0x2cb   :  { %v142_v24 = vpop.xlane.xlu1 %141 }
 0x2cc   :  { %v143_v25 = vrot.slane %v142_v24, 4 }
 0x2ce   :  { %v144_v26 = vadd.f32 %v143_v25, %v142_v24 }
 0x2d0   :  { %v145_v27 = vrot.slane %v144_v26, 2 }
 0x2d2   :  { %v146_v28 = vadd.f32 %v145_v27, %v144_v26 }
 0x2d4   :  { %v147_v29 = vrot.slane %v146_v28, 1 }
 0x2d6   :  { %v148_v30 = vadd.f32 %v147_v29, %v146_v28 }
 0x2d8   :  { %175 = vpush %v148_v30 }
 0x309   :  { %s176_s5 = spop %175 }
 0x30a   :  { %v150_v31 = vstv %s176_s5 }
 0x30b   :  { %151 = vst [vmem:[#allocation7] sm:$0xff] %v150_v31 }
 0x30c   :  { %241 = shalt.err (!%p238_p6)
}
 0x30d   :  { %s242_s9 = scalar_lea.hbm %s316_s2, 128 }
 0x30e   :  { %p243_p7 = scmp.ne.s32.totalorder %s316_s2, %s242_s9  ;;  %p246_p8 = scmp.lt.u32.totalorder %s242_s9, %s316_s2 }
 0x310   :  { %p248_p9 = pnand %p246_p8, %p243_p7 }
 0x312   :  { %251 = shalt.err (!%p248_p9)
}
 0x313   :  { %161 = dma.vmem_to_hbm [thread:$0]  %s159_s4, 128, %s316_s2, [#allocation4]  }
 0x314   :  { %256 = dma.done.wait [#allocation4], 128  }
 0x315   :  { %257 = vsyncadd [#allocation4], 4294967168 }
 0x316   :  { %165 = vsyncpa [#allocation3], 1 }
 0x317   :  { %166 = vsyncpa [#allocation6], 1 }
 0x318   :  { %167 = vsyncpa [#allocation4], 1 }

</bundles_post_ra>
